<compile_context>
chip_gen: v7x
topology: tpu7x:2x2x1
jax: 0.10.0
libtpu: 0.0.40
codegen_flags: <defaults>
</compile_context>

<pallas_src>
import jax
import jax.numpy as jnp
from jax.experimental import pallas as pl
from jax.experimental.pallas import tpu as pltpu


def _cond_disc_kernel(feat_ref, label_ref, w1f_ref, w1l_ref, b1_ref,
                      w2_ref, b2_ref, out_ref):
    # fc1, split over the (virtual) concat axis:
    #   cat([feat, label]) @ W1 == feat @ W1[:F] + label @ W1[F:]
    # bf16 MXU inputs, f32 accumulation.
    h = jnp.dot(feat_ref[...].astype(w1f_ref.dtype), w1f_ref[...],
                preferred_element_type=jnp.float32)
    h = h + jnp.dot(label_ref[...].astype(w1l_ref.dtype), w1l_ref[...],
                    preferred_element_type=jnp.float32)
    h = h + b1_ref[...]                    # bias in f32
    h = jnp.maximum(h, 0.2 * h)            # LeakyReLU(0.2), f32 on the VPU

    # fc2 with out_features == 1: VPU multiply + lane reduce; lane-dense store.
    o = jnp.sum(h * w2_ref[...], axis=-1)                     # [TB]
    out_ref[...] = (o.reshape(1, -1) + b2_ref[...]).astype(out_ref.dtype)


def conditional_discriminator(feat, label, params, *, batch_tile=1024):
    """feat: [B, F], label: [B, L].  params = (w1, b1, w2, b2) with weights stored
    as [in_features, out_features] (so the kernel computes x @ W + b, equivalent
    to PyTorch's x @ W.T + b).  Returns torch-style squeezed output ([B] for
    output_size=1, scalar if B == 1)."""
    w1, b1, w2, b2 = params
    B, F = feat.shape
    _, L = label.shape
    Din, H = w1.shape
    assert Din == F + L, (Din, F, L)
    O = w2.shape[1]
    if O != 1:
        # TODO(synk): general O>1 would use a regular MXU matmul for fc2.
        raise NotImplementedError("kernel implements the module's output_size=1 path")

    # Split fc1's weight along the concat axis (replaces the activation concat)
    # and cast the matmul weights to bf16 once, wrapper-side.
    w1f = w1[:F].astype(jnp.bfloat16)                 # [F, H]
    w1l = w1[F:].astype(jnp.bfloat16)                 # [L, H]
    b1r = b1.reshape(1, H).astype(jnp.float32)        # [1, H]
    w2r = w2.reshape(1, H).astype(jnp.float32)        # fc2 column as a row
    b2r = b2.reshape(1, 1).astype(jnp.float32)        # [1, 1]

    tb = B if B <= batch_tile else batch_tile         # full block for small B
    nb = pl.cdiv(B, tb)

    out = pl.pallas_call(
        _cond_disc_kernel,
        out_shape=jax.ShapeDtypeStruct((1, B), jnp.float32),
        grid=(nb,),
        in_specs=[
            pl.BlockSpec((tb, F), lambda i: (i, 0)),   # feat  (batch-tiled)
            pl.BlockSpec((tb, L), lambda i: (i, 0)),   # label (batch-tiled)
            pl.BlockSpec((F, H), lambda i: (0, 0)),    # W1[:F]  (resident)
            pl.BlockSpec((L, H), lambda i: (0, 0)),    # W1[F:]  (resident)
            pl.BlockSpec((1, H), lambda i: (0, 0)),    # b1
            pl.BlockSpec((1, H), lambda i: (0, 0)),    # w2 row
            pl.BlockSpec((1, 1), lambda i: (0, 0)),    # b2
        ],
        out_specs=pl.BlockSpec((1, tb), lambda i: (0, i)),   # lane-dense row
        compiler_params=pltpu.CompilerParams(
            dimension_semantics=("parallel",)),
    )(feat, label, w1f, w1l, b1r, w2r, b2r)

    # torch .squeeze(): drop all size-1 dims ([1, B] -> [B]; scalar if B == 1)
    return jnp.squeeze(out)


def init_params(key, feat_size, label_size, hidden_size, output_size):
    """Deterministic init mimicking nn.Linear default (uniform +/- 1/sqrt(fan_in)).
    Weights stored transposed: [in_features, out_features]."""
    k1, k2, k3, k4 = jax.random.split(key, 4)
    in1 = feat_size + label_size
    bound1 = 1.0 / jnp.sqrt(in1)
    bound2 = 1.0 / jnp.sqrt(hidden_size)
    w1 = jax.random.uniform(k1, (in1, hidden_size), jnp.float32, -bound1, bound1)
    b1 = jax.random.uniform(k2, (hidden_size,), jnp.float32, -bound1, bound1)
    w2 = jax.random.uniform(k3, (hidden_size, output_size), jnp.float32, -bound2, bound2)
    b2 = jax.random.uniform(k4, (output_size,), jnp.float32, -bound2, bound2)
    return w1, b1, w2, b2


if __name__ == "__main__":
    # Small shapes consistent with the module (feat=label=hidden=32, out=1, batch=2).
    B, F_SZ, L_SZ, H_SZ, O_SZ = 2, 32, 32, 32, 1

    key = jax.random.PRNGKey(0)
    k_feat, k_label, k_params = jax.random.split(key, 3)
    feat = jax.random.normal(k_feat, (B, F_SZ), jnp.float32)
    label = jax.random.normal(k_label, (B, L_SZ), jnp.float32)
    params = init_params(k_params, F_SZ, L_SZ, H_SZ, O_SZ)

    out = conditional_discriminator(feat, label, params)
    out = jax.block_until_ready(out)

    # Pure-JAX reference mirroring the kernel's numerics (bf16 fc1 inputs,
    # f32 accumulation / bias / activation / fc2).
    w1, b1, w2, b2 = params
    x = jnp.concatenate([feat, label], axis=-1)
    h = jnp.dot(x.astype(jnp.bfloat16), w1.astype(jnp.bfloat16),
                preferred_element_type=jnp.float32) + b1
    h = jnp.maximum(h, 0.2 * h)
    ref = jnp.squeeze(h @ w2 + b2)

    assert out.shape == (B,), out.shape
    assert jnp.allclose(out, ref, atol=1e-3, rtol=1e-3), (out, ref)

    print("KERNEL_OK")
</pallas_src>

<mosaic_0001>
module attributes {stable_mosaic.version = 11 : i64} {
  func.func @_cond_disc_kernel(%arg0: i32, %arg1: memref<2x32xf32, #tpu.memory_space<vmem>>, %arg2: memref<2x32xf32, #tpu.memory_space<vmem>>, %arg3: memref<32x32xbf16, #tpu.memory_space<vmem>>, %arg4: memref<32x32xbf16, #tpu.memory_space<vmem>>, %arg5: memref<1x32xf32, #tpu.memory_space<vmem>>, %arg6: memref<1x32xf32, #tpu.memory_space<vmem>>, %arg7: memref<1x1xf32, #tpu.memory_space<vmem>>, %arg8: memref<1x2xf32, #tpu.memory_space<vmem>>) attributes {dimension_semantics = [#tpu.dimension_semantics<parallel>], iteration_bounds = array<i64: 1>, scalar_prefetch = 0 : i64, scratch_operands = 0 : i64, tpu.core_type = #tpu.core_type<tc>, window_params = [{transform_indices = @transform_0, window_bounds = array<i64: 2, 32>}, {transform_indices = @transform_1, window_bounds = array<i64: 2, 32>}, {pipeline_mode = #tpu.pipeline_mode<synchronous>, transform_indices = @transform_2, window_bounds = array<i64: 32, 32>}, {pipeline_mode = #tpu.pipeline_mode<synchronous>, transform_indices = @transform_3, window_bounds = array<i64: 32, 32>}, {pipeline_mode = #tpu.pipeline_mode<synchronous>, transform_indices = @transform_4, window_bounds = array<i64: 1, 32>}, {pipeline_mode = #tpu.pipeline_mode<synchronous>, transform_indices = @transform_5, window_bounds = array<i64: 1, 32>}, {pipeline_mode = #tpu.pipeline_mode<synchronous>, transform_indices = @transform_6, window_bounds = array<i64: 1, 1>}, {transform_indices = @transform_7, window_bounds = array<i64: 1, 2>}]} {
    %c0 = arith.constant 0 : index
    %c0_0 = arith.constant 0 : index
    %0 = vector.load %arg1[%c0, %c0_0] : memref<2x32xf32, #tpu.memory_space<vmem>>, vector<2x32xf32>
    %1 = arith.truncf %0 : vector<2x32xf32> to vector<2x32xbf16>
    %c0_1 = arith.constant 0 : index
    %c0_2 = arith.constant 0 : index
    %2 = vector.load %arg3[%c0_1, %c0_2] : memref<32x32xbf16, #tpu.memory_space<vmem>>, vector<32x32xbf16>
    %cst = arith.constant dense<0.000000e+00> : vector<2x32xf32>
    %3 = tpu.matmul %1, %2, %cst {dimension_numbers = #tpu.dot_dimension_numbers<[1], [0], [0], [1], [0, 0, 1, 1], [], []>} : vector<2x32xbf16>, vector<32x32xbf16>, vector<2x32xf32> -> vector<2x32xf32>
    %c0_3 = arith.constant 0 : index
    %c0_4 = arith.constant 0 : index
    %4 = vector.load %arg2[%c0_3, %c0_4] : memref<2x32xf32, #tpu.memory_space<vmem>>, vector<2x32xf32>
    %5 = arith.truncf %4 : vector<2x32xf32> to vector<2x32xbf16>
    %c0_5 = arith.constant 0 : index
    %c0_6 = arith.constant 0 : index
    %6 = vector.load %arg4[%c0_5, %c0_6] : memref<32x32xbf16, #tpu.memory_space<vmem>>, vector<32x32xbf16>
    %cst_7 = arith.constant dense<0.000000e+00> : vector<2x32xf32>
    %7 = tpu.matmul %5, %6, %cst_7 {dimension_numbers = #tpu.dot_dimension_numbers<[1], [0], [0], [1], [0, 0, 1, 1], [], []>} : vector<2x32xbf16>, vector<32x32xbf16>, vector<2x32xf32> -> vector<2x32xf32>
    %8 = arith.addf %3, %7 : vector<2x32xf32>
    %c0_8 = arith.constant 0 : index
    %c0_9 = arith.constant 0 : index
    %9 = vector.load %arg5[%c0_8, %c0_9] : memref<1x32xf32, #tpu.memory_space<vmem>>, vector<1x32xf32>
    %10 = vector.broadcast %9 : vector<1x32xf32> to vector<2x32xf32>
    %11 = arith.addf %8, %10 : vector<2x32xf32>
    %cst_10 = arith.constant 2.000000e-01 : f32
    %12 = vector.broadcast %cst_10 : f32 to vector<2x32xf32>
    %13 = arith.mulf %12, %11 : vector<2x32xf32>
    %14 = arith.maximumf %11, %13 : vector<2x32xf32>
    %c0_11 = arith.constant 0 : index
    %c0_12 = arith.constant 0 : index
    %15 = vector.load %arg6[%c0_11, %c0_12] : memref<1x32xf32, #tpu.memory_space<vmem>>, vector<1x32xf32>
    %16 = vector.broadcast %15 : vector<1x32xf32> to vector<2x32xf32>
    %17 = arith.mulf %14, %16 : vector<2x32xf32>
    %cst_13 = arith.constant dense<0.000000e+00> : vector<2xf32>
    %18 = vector.multi_reduction <add>, %17, %cst_13 [1] : vector<2x32xf32> to vector<2xf32>
    %19 = vector.shape_cast %18 : vector<2xf32> to vector<1x2xf32>
    %c0_14 = arith.constant 0 : index
    %c0_15 = arith.constant 0 : index
    %20 = vector.load %arg7[%c0_14, %c0_15] : memref<1x1xf32, #tpu.memory_space<vmem>>, vector<1x1xf32>
    %21 = vector.broadcast %20 : vector<1x1xf32> to vector<1x2xf32>
    %22 = arith.addf %19, %21 : vector<1x2xf32>
    %c0_16 = arith.constant 0 : index
    %c0_17 = arith.constant 0 : index
    %23 = vector.load %arg8[%c0_16, %c0_17] : memref<1x2xf32, #tpu.memory_space<vmem>>, vector<1x2xf32>
    tpu.vector_store %arg8[%c0_16, %c0_17], %22 {strides = array<i32>} : memref<1x2xf32, #tpu.memory_space<vmem>>, vector<1x2xf32>,
    return
  }
  func.func @transform_0(%arg0: i32) -> (i32, i32) {
    %c0_i32 = arith.constant 0 : i32
    %c0_i32_0 = arith.constant 0 : i32
    return %arg0, %c0_i32 : i32, i32
  }
  func.func @transform_1(%arg0: i32) -> (i32, i32) {
    %c0_i32 = arith.constant 0 : i32
    %c0_i32_0 = arith.constant 0 : i32
    return %arg0, %c0_i32 : i32, i32
  }
  func.func @transform_2(%arg0: i32) -> (i32, i32) {
    %c0_i32 = arith.constant 0 : i32
    %c0_i32_0 = arith.constant 0 : i32
    %c0_i32_1 = arith.constant 0 : i32
    return %c0_i32, %c0_i32_0 : i32, i32
  }
  func.func @transform_3(%arg0: i32) -> (i32, i32) {
    %c0_i32 = arith.constant 0 : i32
    %c0_i32_0 = arith.constant 0 : i32
    %c0_i32_1 = arith.constant 0 : i32
    return %c0_i32, %c0_i32_0 : i32, i32
  }
  func.func @transform_4(%arg0: i32) -> (i32, i32) {
    %c0_i32 = arith.constant 0 : i32
    %c0_i32_0 = arith.constant 0 : i32
    %c0_i32_1 = arith.constant 0 : i32
    return %c0_i32, %c0_i32_0 : i32, i32
  }
  func.func @transform_5(%arg0: i32) -> (i32, i32) {
    %c0_i32 = arith.constant 0 : i32
    %c0_i32_0 = arith.constant 0 : i32
    %c0_i32_1 = arith.constant 0 : i32
    return %c0_i32, %c0_i32_0 : i32, i32
  }
  func.func @transform_6(%arg0: i32) -> (i32, i32) {
    %c0_i32 = arith.constant 0 : i32
    %c0_i32_0 = arith.constant 0 : i32
    %c0_i32_1 = arith.constant 0 : i32
    return %c0_i32, %c0_i32_0 : i32, i32
  }
  func.func @transform_7(%arg0: i32) -> (i32, i32) {
    %c0_i32 = arith.constant 0 : i32
    %c0_i32_0 = arith.constant 0 : i32
    return %c0_i32, %arg0 : i32, i32
  }
}

</mosaic_0001>

<bundles_post_ra>
// kernel: tpu_custom_call.1
= control target key start
LH: loop header
LB: loop body
LE: loop exit
PB: predicated region body
PF: predicated region fallthrough
CT: control target
= control target key end

     0   :  { %s454_s0 = inlined_call_operand.vmem [shape: f32[2,32], index: 0, kind: input, shape index: {}]   ;;  %s455_s1 = inlined_call_operand.vmem [shape: f32[2,32], index: 1, kind: input, shape index: {}]   ;;  %s456_s2 = inlined_call_operand.hbm [shape: bf16[32,32], index: 2, kind: input, shape index: {}]   ;;  %s457_s3 = inlined_call_operand.hbm [shape: bf16[32,32], index: 3, kind: input, shape index: {}]   ;;  %s458_s4 = inlined_call_operand.vmem [shape: f32[1,32], index: 4, kind: input, shape index: {}]   ;;  %s459_s5 = inlined_call_operand.vmem [shape: f32[1,32], index: 5, kind: input, shape index: {}]   ;;  %s460_s6 = inlined_call_operand.<no memory space> [shape: f32[1,1], index: 6, kind: input, shape index: {}]   ;;  %s461_s7 = inlined_call_operand.hbm [shape: f32[1,2], index: 7, kind: output, shape index: {}]  }
   0x1   :  { %v12_v0 = vstv %s460_s6 }
   0x2   :  { %13 = vst [vmem:[#allocation2] sm:$0x1] %v12_v0 }
   0x3   :  { %14 = vsyncpa [#allocation4], 0 }
   0x4   :  { %15 = vsyncpa [#allocation7], 0 }
   0x5   :  { %16 = vsyncpa [#allocation5], 0  ;;  %s355_s26 = smov [#allocation3]   ;;  %s283_s30 = scalar_lea.hbm %s456_s2, 256 }
   0x6   :  { %s26_s27 = sshll.u32 %s355_s26, 4  ;;  %p284_p0 = scmp.ne.s32.totalorder %s456_s2, %s283_s30  ;;  %s27_s27 = int_to_ptr.vmem [resolvable:$true] %s26_s27 }
   0x7   :  { %p287_p1 = scmp.lt.u32.totalorder %s283_s30, %s456_s2 }
   0x9   :  { %p289_p2 = pnand %p287_p1, %p284_p0 }
   0xb   :  { %292 = shalt.err (!%p289_p2)
}
   0xc   :  { %s293_s6 = scalar_lea.vmem %s27_s27, 256  ;;  %p298_p4 = scmp.lt.s32.totalorder %s27_s27, %s27_s27 }
   0xd   :  { %p294_p3 = scmp.ne.s32.totalorder %s27_s27, %s293_s6  ;;  %p299_p5 = scmp.lt.s32.totalorder %s293_s6, %s293_s6 }
   0xf   :  { %p300_p6 = por %p299_p5, %p298_p4 }
  0x11   :  { %p301_p7 = pnand %p300_p6, %p294_p3 }
  0x13   :  { %304 = shalt.err (!%p301_p7)
}
  0x14   :  { %s356_s12 = smov 64   ;;  %s357_s13 = smov 4  }
  0x15   :  { %32 = dma.hbm_to_vmem [thread:$0]  %s456_s2, 256, %s27_s27, [#allocation4], %s356_s12, %s356_s12, %s357_s13  }
  0x16   :  { %s358_s16 = smov [#allocation6]   ;;  %s305_s20 = scalar_lea.hbm %s457_s3, 256 }
  0x17   :  { %s38_s17 = sshll.u32 %s358_s16, 4  ;;  %p306_p8 = scmp.ne.s32.totalorder %s457_s3, %s305_s20  ;;  %s39_s17 = int_to_ptr.vmem [resolvable:$true] %s38_s17 }
  0x18   :  { %p309_p9 = scmp.lt.u32.totalorder %s305_s20, %s457_s3 }
  0x1a   :  { %p311_p10 = pnand %p309_p9, %p306_p8 }
  0x1c   :  { %314 = shalt.err (!%p311_p10)
}
  0x1d   :  { %s315_s25 = scalar_lea.vmem %s39_s17, 256  ;;  %p320_p12 = scmp.lt.s32.totalorder %s39_s17, %s39_s17 }
  0x1e   :  { %p316_p11 = scmp.ne.s32.totalorder %s39_s17, %s315_s25  ;;  %p321_p13 = scmp.lt.s32.totalorder %s315_s25, %s315_s25 }
  0x20   :  { %p322_p0 = por %p321_p13, %p320_p12 }
  0x22   :  { %p323_p1 = pnand %p322_p0, %p316_p11 }
  0x24   :  { %326 = shalt.err (!%p323_p1)
}
  0x25   :  { %44 = dma.hbm_to_vmem [thread:$0]  %s457_s3, 256, %s39_s17, [#allocation7], %s356_s12, %s356_s12, %s357_s13  }
  0x26   :  { %349 = dma.done.wait [#allocation4], 256  }
  0x27   :  { %350 = vsyncadd [#allocation4], 4294967040 }
  0x28   :  { %351 = dma.done.wait [#allocation7], 256  }
  0x29   :  { %352 = vsyncadd [#allocation7], 4294967040  ;;  %v359_v1 = vmov 0.0   ;;  %vm360_vm0 = vmmov 0   ;;  %v279_v2 = vld [vmem:[#allocation6] sm:$0xff]   ;;  %v280_v3 = vld [vmem:[#allocation3] sm:$0xff]   ;;  %v209_v28 = vlaneseq }
  0x2a   :  { %254 = vmatprep.subr.bf16.mxu0 %v359_v1  ;;  %262 = vmatprep.subr.bf16.mxu1 %v359_v1  ;;  %v281_v4 = vld [vmem:[#allocation6 + $0x8] sm:$0xff]   ;;  %v282_v5 = vld [vmem:[#allocation3 + $0x8] sm:$0xff]   ;;  %vm82_vm1 = vcmask 261120   ;;  %v361_v10 = vmov 0   ;;  %vm199_vm2 = vcmask 254976   ;;  %vm222_vm3 = vcmask 8192  }
  0x2b   :  { %258 = vmatprep.mubr.msk.bf16.mxu0 %vm360_vm0, %v359_v1  ;;  %266 = vmatprep.mubr.msk.bf16.mxu1 %vm360_vm0, %v359_v1  ;;  %v64_v6 = vld [vmem:[%s455_s1] sm:$0x3]  ;;  %v210_v29 = vshrl.u32 %v209_v28, 7  ;;  %v216_v32 = vand.u32 127, %v209_v28 }
  0x2c   :  { %255 = vmatpush3.bf16.msra.mxu0 %v279_v2  ;;  %263 = vmatpush3.bf16.msra.mxu1 %v280_v3  ;;  %v58_v7 = vld [vmem:[%s454_s0] sm:$0x3]  ;;  %v65_v8 = vpack.c.bf16 %v64_v6, %v64_v6 }
  0x2d   :  { %256 = vmatprep.subr.bf16.mxu0 %v359_v1  ;;  %264 = vmatprep.subr.bf16.mxu1 %v359_v1  ;;  %v59_v9 = vpack.c.bf16 %v58_v7, %v58_v7  ;;  %v246_v13 = vld [vmem:[%s458_s4] ss:$0 sm:$0xff]  ;;  %v211_v31 = vsub.s32 0, %v210_v29  ;;  %v219_v34 = vsub.s32 %v216_v32, %v210_v29  ;;  %s362_s4 = smov [#allocation8]  }
  0x2e   :  { %278 = vset.pattern.permute.xlu0 %v361_v10  ;;  %v247_v23 = vld [vmem:[%s459_s5] ss:$0 sm:$0xff]  ;;  %s230_s9 = sshll.u32 %s362_s4, 4  ;;  %s231_s9 = int_to_ptr.vmem [resolvable:$true] %s230_s9 }
  0x2f   :  { %v203_v27 = vld [vmem:[#allocation2] sm:$0x1]  ;;  %s327_s5 = scalar_lea.vmem %s231_s9, 16  ;;  %s331_s10 = scalar_lea.vmem %s231_s9, 32 }
  0x30   :  { %257 = vmatpush3.bf16.msra.mxu0 %v281_v4  ;;  %265 = vmatpush3.bf16.msra.mxu1 %v282_v5  ;;  %p328_p2 = scmp.ne.s32.totalorder %s231_s9, %s327_s5  ;;  %p332_p3 = scmp.lt.s32.totalorder %s231_s9, %s231_s9 }
  0x31   :  { %p333_p4 = scmp.lt.s32.totalorder %s331_s10, %s327_s5 }
  0x33   :  { %259 = vmatmul.mubr.msk.bf16.vlgmr.msra.gmra.mrb[0].mxu0 %vm82_vm1, %v65_v8  ;;  %267 = vmatmul.mubr.msk.bf16.vlgmr.msra.gmra.mrb[0].mxu1 %vm82_vm1, %v59_v9  ;;  %p334_p5 = por %p333_p4, %p332_p3 }
  0x35   :  { %p335_p6 = pnand %p334_p5, %p328_p2 }
 0x106   :  { %v120_v11 = vpop.f32.mrb[0].mxu0  ;;  %v175_v12 = vpop.f32.mrb[0].mxu1 }
 0x107   :  { %v260_v14 = vpop.f32.mrb[1].mxu0  ;;  %v176_v15 = vadd.f32 %v175_v12, %v120_v11  ;;  %v268_v16 = vpop.f32.mrb[1].mxu1 }
 0x108   :  { %v123_v17 = vpop.f32.mrb[2].mxu0  ;;  %v178_v18 = vpop.f32.mrb[2].mxu1 }
 0x109   :  { %v261_v19 = vpop.f32.mrb[3].mxu0  ;;  %v188_v20 = vadd.f32 %v246_v13, %v176_v15  ;;  %v269_v21 = vpop.f32.mrb[3].mxu1 }
 0x10b   :  { %v189_v22 = vmul.f32 0.2, %v188_v20 }
 0x10d   :  { %v190_v24 = vmax.f32 %v188_v20, %v189_v22 }
 0x10f   :  { %v198_v25 = vmul.f32 %v247_v23, %v190_v24 }
 0x111   :  { %v200_v26 = vsel %vm199_vm2, %v198_v25, 0.0 }
 0x112   :  { %201 = vadd.xlane.f32.xlu0 %v200_v26 }
 0x128   :  { %206 = vperm.xlu0 %278, %v203_v27  }
 0x19f   :  { %v202_v30 = vpop.xlane.xlu0 %201 }
 0x1a7   :  { %v207_v33 = vpop.permute.xlu0 %206 }
 0x1a8   :  { %v212_v35 = vrot.slane %v207_v33, %v211_v31 }
 0x1aa   :  { %v213_v36 = vadd.f32 %v212_v35, %v202_v30 }
 0x1ac   :  { %v220_v37 = vrot.slane %v213_v36, %v219_v34 }
 0x1ae   :  { %223 = vst.msk [vmem:[#allocation8] sm:$0x1] %vm222_vm3, %v220_v37 }
 0x1af   :  { %338 = shalt.err (!%p335_p6)
}
 0x1b0   :  { %s339_s12 = scalar_lea.hbm %s461_s7, 16 }
 0x1b1   :  { %p340_p7 = scmp.ne.s32.totalorder %s461_s7, %s339_s12  ;;  %p343_p8 = scmp.lt.u32.totalorder %s339_s12, %s461_s7 }
 0x1b3   :  { %p345_p9 = pnand %p343_p8, %p340_p7 }
 0x1b5   :  { %348 = shalt.err (!%p345_p9)
}
 0x1b6   :  { %233 = dma.vmem_to_hbm [thread:$0]  %s231_s9, 16, %s461_s7, [#allocation5]  }
 0x1b7   :  { %353 = dma.done.wait [#allocation5], 16  }
 0x1b8   :  { %354 = vsyncadd [#allocation5], 4294967280 }
 0x1b9   :  { %237 = vsyncpa [#allocation4], 1 }
 0x1ba   :  { %238 = vsyncpa [#allocation7], 1 }
 0x1bb   :  { %239 = vsyncpa [#allocation5], 1 }

</bundles_post_ra>
